<compile_context>
chip_gen: v7x
topology: tpu7x:2x2x1
jax: 0.10.0
libtpu: 0.0.40
codegen_flags: <defaults>
</compile_context>

<pallas_src>
import jax
import jax.numpy as jnp
from jax.experimental import pallas as pl
from jax.experimental.pallas import tpu as pltpu


def _round_up(x, m):
    return ((x + m - 1) // m) * m


def attention_kernel(x_ref, w_ref, b_ref, out_ref):
    # x_ref  : (TB, S, F)  batch tile of the input (input dtype)
    # w_ref  : (1, 1, F)   attention projection vector (same dtype as x)
    # b_ref  : (1, S, 1)   per-step bias
    # out_ref: (TB, F)
    x = x_ref[...]
    w = w_ref[...]
    b = b_ref[...].astype(jnp.float32)

    # eij = (x @ w) + b as a lane-dim (F) multiply + reduce with f32
    # accumulation.  The elementwise product stays in x.dtype (no full-tile
    # upcast of x); S stays in the sublane position end-to-end.
    # TODO(synk): on v7x, if the bundle dump shows the VPU/XLU slot binding,
    # push this F-reduce onto the MXU (dot_general against w); kept on the VPU
    # here because the required (TB*S, F) reshape relayouts when S % 8 != 0.
    eij = jnp.sum(x * w, axis=-1, keepdims=True, dtype=jnp.float32) + b   # (TB,S,1)
    eij = jnp.tanh(eij)
    a = jnp.exp(eij)                                                      # (TB,S,1)

    # Softmax normalization.  tanh bounds eij to [-1,1] so the unstabilized exp
    # is safe (matches PyTorch).  EUP approx reciprocal + two Newton steps on
    # the tiny (TB,1,1) denominator restore full f32 accuracy at ~zero cost.
    denom = jnp.sum(a, axis=1, keepdims=True)                             # (TB,1,1)
    inv = pl.reciprocal(denom, approx=True)
    inv = inv * (2.0 - denom * inv)
    inv = inv * (2.0 - denom * inv)
    # 1e-10 is added AFTER the division, exactly as in the PyTorch module.
    a = a * inv + 1e-10                                                   # (TB,S,1)

    # Weighted sum over the step dim.  Cast the per-step weights down to the
    # input dtype so the full-tile multiply runs at x's width; accumulate f32.
    out = jnp.sum(x * a.astype(x.dtype), axis=1, dtype=jnp.float32)       # (TB,F)
    out_ref[...] = out.astype(out_ref.dtype)


def attention_forward(x, weight, bias, *, target_block_bytes=4 * 1024 * 1024):
    """x: (B, S, F); weight: (F, 1); bias: (S,). Returns (B, F)."""
    B, S, F = x.shape
    itemsize = jnp.dtype(x.dtype).itemsize

    # ---- per-generation VMEM budget -------------------------------------
    # v7x has 64 MiB physical VMEM per TensorCore (v5e/v6e: 128 MiB); keep the
    # whole pipeline (double-buffered x + out blocks + f32 temporaries) well
    # inside half of it.
    try:
        phys_vmem = int(pltpu.get_tpu_info().vmem_capacity_bytes)
    except Exception:  # pragma: no cover - conservative fallback
        phys_vmem = 64 * 1024 * 1024
    vmem_budget = min(phys_vmem // 2, 64 * 1024 * 1024)

    # Estimated VMEM bytes per batch row of one grid step:
    #   2x double-buffered x block + 2x out block + f32 elementwise temps.
    per_row = (2 * S * F + 2 * F) * itemsize + 2 * S * F * 4

    # Batch tile: ~target_block_bytes of x per block (Pallas double-buffers
    # it), clamped to the VMEM budget, multiple of 8 for a sublane-aligned
    # output block.
    rows_by_target = target_block_bytes // max(1, S * F * itemsize)
    rows_by_vmem = max(1, (vmem_budget - (1 << 20)) // per_row)
    tb = max(8, (min(rows_by_target, rows_by_vmem) // 8) * 8)
    # TODO(synk): if even an 8-row block exceeds VMEM (very large S*F), split
    # S (two-pass softmax) or F with a second grid axis instead of one block.

    # v7x has 2 TensorCores: keep the "parallel" batch axis at >= 2 grid steps
    # so both cores get work (no-op on v5e/v6e which have 1 TC).
    if B > 8:
        tb = min(tb, _round_up(pl.cdiv(B, 2), 8))

    if tb >= B:
        tb = B  # single block covering the whole batch (block dim == array dim)
    grid = (pl.cdiv(B, tb),)

    x_block_bytes = tb * S * F * itemsize
    out_block_bytes = tb * F * itemsize
    est_vmem = 2 * (x_block_bytes + out_block_bytes) + 2 * tb * S * F * 4 + (1 << 20)
    vmem_limit = int(min(phys_vmem - (2 << 20), max(vmem_budget, est_vmem)))

    # Tiny parameter tensors; w matches x's dtype so x is never upcast
    # full-tile inside the kernel.  No padding / no extra copy of x.
    w_r = weight[:, 0].astype(x.dtype).reshape(1, 1, F)
    b_r = bias.astype(jnp.float32).reshape(1, S, 1)

    out = pl.pallas_call(
        attention_kernel,
        out_shape=jax.ShapeDtypeStruct((B, F), x.dtype),
        grid=grid,
        in_specs=[
            # Full (S, F) trailing dims => legal block regardless of F % 128;
            # partial last batch tile handled by Pallas edge masking (safe:
            # every output row depends only on its own input row).
            pl.BlockSpec((tb, S, F), lambda i: (i, 0, 0)),
            pl.BlockSpec((1, 1, F), lambda i: (0, 0, 0)),
            pl.BlockSpec((1, S, 1), lambda i: (0, 0, 0)),
        ],
        out_specs=pl.BlockSpec((tb, F), lambda i: (i, 0)),
        compiler_params=pltpu.CompilerParams(
            dimension_semantics=("parallel",),
            vmem_limit_bytes=vmem_limit),
        cost_estimate=pl.CostEstimate(
            flops=int(4 * B * S * F),
            transcendentals=int(2 * B * S),
            bytes_accessed=int(B * S * F * itemsize + B * F * itemsize)),
    )(x, w_r, b_r)

    return out


def attention_ref(x, weight, bias):
    B, S, F = x.shape
    eij = (x.reshape(-1, F).astype(jnp.float32) @ weight.astype(jnp.float32))
    eij = eij.reshape(B, S) + bias[None, :].astype(jnp.float32)
    eij = jnp.tanh(eij)
    a = jnp.exp(eij)
    a = a / jnp.sum(a, axis=1, keepdims=True) + 1e-10
    return jnp.sum(x.astype(jnp.float32) * a[:, :, None], axis=1)


if __name__ == "__main__":
    key = jax.random.PRNGKey(0)
    kx, kw, kx2 = jax.random.split(key, 3)

    # --- primary small-shape check (matches module usage) -----------------
    B, S, F = 2, 8, 32   # batch, step_dim, feature_dim
    x = jax.random.normal(kx, (B, S, F), dtype=jnp.float32)
    bound = (6.0 / (F + 1)) ** 0.5   # deterministic xavier_uniform-style init
    weight = jax.random.uniform(kw, (F, 1), dtype=jnp.float32,
                                minval=-bound, maxval=bound)
    bias = jnp.zeros((S,), dtype=jnp.float32)   # module initializes bias to 0

    # TODO(synk): optional `mask` argument of Attention.forward is not
    # implemented (module is exercised with mask=None).

    out = jax.block_until_ready(attention_forward(x, weight, bias))
    ref = attention_ref(x, weight, bias)
    assert out.shape == (B, F)
    assert jnp.allclose(out, ref, atol=1e-5, rtol=1e-5), \
        float(jnp.max(jnp.abs(out - ref)))

    # --- secondary check: multi-block grid + partial last batch tile ------
    B2 = 13
    x2 = jax.random.normal(kx2, (B2, S, F), dtype=jnp.float32)
    out2 = jax.block_until_ready(attention_forward(x2, weight, bias))
    ref2 = attention_ref(x2, weight, bias)
    assert out2.shape == (B2, F)
    assert jnp.allclose(out2, ref2, atol=1e-5, rtol=1e-5), \
        float(jnp.max(jnp.abs(out2 - ref2)))

    print("KERNEL_OK")
</pallas_src>

<mosaic_0001>
module attributes {stable_mosaic.version = 11 : i64} {
  func.func @attention_kernel(%arg0: i32, %arg1: memref<2x8x32xf32, #tpu.memory_space<vmem>>, %arg2: memref<1x1x32xf32, #tpu.memory_space<vmem>>, %arg3: memref<1x8x1xf32, #tpu.memory_space<vmem>>, %arg4: memref<2x32xf32, #tpu.memory_space<vmem>>) attributes {dimension_semantics = [#tpu.dimension_semantics<parallel>], iteration_bounds = array<i64: 1>, scalar_prefetch = 0 : i64, scratch_operands = 0 : i64, tpu.core_type = #tpu.core_type<tc>, window_params = [{transform_indices = @transform_0, window_bounds = array<i64: 2, 8, 32>}, {pipeline_mode = #tpu.pipeline_mode<synchronous>, transform_indices = @transform_1, window_bounds = array<i64: 1, 1, 32>}, {pipeline_mode = #tpu.pipeline_mode<synchronous>, transform_indices = @transform_2, window_bounds = array<i64: 1, 8, 1>}, {transform_indices = @transform_3, window_bounds = array<i64: 2, 32>}]} {
    %c0 = arith.constant 0 : index
    %c0_0 = arith.constant 0 : index
    %c0_1 = arith.constant 0 : index
    %0 = vector.load %arg1[%c0, %c0_0, %c0_1] : memref<2x8x32xf32, #tpu.memory_space<vmem>>, vector<2x8x32xf32>
    %c0_2 = arith.constant 0 : index
    %c0_3 = arith.constant 0 : index
    %c0_4 = arith.constant 0 : index
    %1 = vector.load %arg2[%c0_2, %c0_3, %c0_4] : memref<1x1x32xf32, #tpu.memory_space<vmem>>, vector<1x1x32xf32>
    %c0_5 = arith.constant 0 : index
    %c0_6 = arith.constant 0 : index
    %c0_7 = arith.constant 0 : index
    %2 = vector.load %arg3[%c0_5, %c0_6, %c0_7] : memref<1x8x1xf32, #tpu.memory_space<vmem>>, vector<1x8x1xf32>
    %3 = vector.broadcast %1 : vector<1x1x32xf32> to vector<2x8x32xf32>
    %4 = arith.mulf %0, %3 : vector<2x8x32xf32>
    %cst = arith.constant dense<0.000000e+00> : vector<2x8xf32>
    %5 = vector.multi_reduction <add>, %4, %cst [2] : vector<2x8x32xf32> to vector<2x8xf32>
    %6 = vector.shape_cast %5 : vector<2x8xf32> to vector<2x8x1xf32>
    %7 = vector.broadcast %2 : vector<1x8x1xf32> to vector<2x8x1xf32>
    %8 = arith.addf %6, %7 : vector<2x8x1xf32>
    %9 = math.tanh %8 : vector<2x8x1xf32>
    %10 = math.exp %9 : vector<2x8x1xf32>
    %cst_8 = arith.constant dense<0.000000e+00> : vector<2x1xf32>
    %11 = vector.multi_reduction <add>, %10, %cst_8 [1] : vector<2x8x1xf32> to vector<2x1xf32>
    %12 = vector.shape_cast %11 : vector<2x1xf32> to vector<2x1x1xf32>
    %13 = tpu.reciprocal %12 {approx = true} : vector<2x1x1xf32> -> vector<2x1x1xf32>
    %14 = arith.mulf %12, %13 : vector<2x1x1xf32>
    %cst_9 = arith.constant 2.000000e+00 : f32
    %15 = vector.broadcast %cst_9 : f32 to vector<2x1x1xf32>
    %16 = arith.subf %15, %14 : vector<2x1x1xf32>
    %17 = arith.mulf %13, %16 : vector<2x1x1xf32>
    %18 = arith.mulf %12, %17 : vector<2x1x1xf32>
    %cst_10 = arith.constant 2.000000e+00 : f32
    %19 = vector.broadcast %cst_10 : f32 to vector<2x1x1xf32>
    %20 = arith.subf %19, %18 : vector<2x1x1xf32>
    %21 = arith.mulf %17, %20 : vector<2x1x1xf32>
    %22 = vector.broadcast %21 : vector<2x1x1xf32> to vector<2x8x1xf32>
    %23 = arith.mulf %10, %22 : vector<2x8x1xf32>
    %cst_11 = arith.constant 1.000000e-10 : f32
    %24 = vector.broadcast %cst_11 : f32 to vector<2x8x1xf32>
    %25 = arith.addf %23, %24 : vector<2x8x1xf32>
    %26 = vector.broadcast %25 : vector<2x8x1xf32> to vector<2x8x32xf32>
    %27 = arith.mulf %0, %26 : vector<2x8x32xf32>
    %cst_12 = arith.constant dense<0.000000e+00> : vector<2x32xf32>
    %28 = vector.multi_reduction <add>, %27, %cst_12 [1] : vector<2x8x32xf32> to vector<2x32xf32>
    %c0_13 = arith.constant 0 : index
    %c0_14 = arith.constant 0 : index
    %29 = vector.load %arg4[%c0_13, %c0_14] : memref<2x32xf32, #tpu.memory_space<vmem>>, vector<2x32xf32>
    tpu.vector_store %arg4[%c0_13, %c0_14], %28 {strides = array<i32>} : memref<2x32xf32, #tpu.memory_space<vmem>>, vector<2x32xf32>,
    return
  }
  func.func @transform_0(%arg0: i32) -> (i32, i32, i32) {
    %c0_i32 = arith.constant 0 : i32
    %c0_i32_0 = arith.constant 0 : i32
    %c0_i32_1 = arith.constant 0 : i32
    return %arg0, %c0_i32, %c0_i32_0 : i32, i32, i32
  }
  func.func @transform_1(%arg0: i32) -> (i32, i32, i32) {
    %c0_i32 = arith.constant 0 : i32
    %c0_i32_0 = arith.constant 0 : i32
    %c0_i32_1 = arith.constant 0 : i32
    %c0_i32_2 = arith.constant 0 : i32
    return %c0_i32, %c0_i32_0, %c0_i32_1 : i32, i32, i32
  }
  func.func @transform_2(%arg0: i32) -> (i32, i32, i32) {
    %c0_i32 = arith.constant 0 : i32
    %c0_i32_0 = arith.constant 0 : i32
    %c0_i32_1 = arith.constant 0 : i32
    %c0_i32_2 = arith.constant 0 : i32
    return %c0_i32, %c0_i32_0, %c0_i32_1 : i32, i32, i32
  }
  func.func @transform_3(%arg0: i32) -> (i32, i32) {
    %c0_i32 = arith.constant 0 : i32
    %c0_i32_0 = arith.constant 0 : i32
    return %arg0, %c0_i32 : i32, i32
  }
}

</mosaic_0001>

<bundles_post_ra>
// kernel: tpu_custom_call.1
= control target key start
LH: loop header
LB: loop body
LE: loop exit
PB: predicated region body
PF: predicated region fallthrough
CT: control target
= control target key end

     0   :  { %8 = vsyncpa [#allocation3], 0  ;;  %s272_s0 = inlined_call_operand.hbm [shape: f32[2,8,32], index: 0, kind: input, shape index: {}]   ;;  %s273_s1 = inlined_call_operand.vmem [shape: f32[1,1,32], index: 1, kind: input, shape index: {}]   ;;  %s274_s2 = inlined_call_operand.vmem [shape: f32[1,8,1], index: 2, kind: input, shape index: {}]   ;;  %s275_s3 = inlined_call_operand.hbm [shape: f32[2,32], index: 3, kind: output, shape index: {}]  }
   0x1   :  { %9 = vsyncpa [#allocation4], 0  ;;  %s205_s12 = smov [#allocation2]   ;;  %s157_s16 = scalar_lea.hbm %s272_s0, 256 }
   0x2   :  { %s15_s13 = sshll.u32 %s205_s12, 4  ;;  %p158_p0 = scmp.ne.s32.totalorder %s272_s0, %s157_s16  ;;  %s16_s13 = int_to_ptr.vmem [resolvable:$true] %s15_s13 }
   0x3   :  { %p161_p1 = scmp.lt.u32.totalorder %s157_s16, %s272_s0 }
   0x5   :  { %p163_p2 = pnand %p161_p1, %p158_p0 }
   0x7   :  { %166 = shalt.err (!%p163_p2)
}
   0x8   :  { %s167_s21 = scalar_lea.vmem %s16_s13, 256  ;;  %p172_p4 = scmp.lt.s32.totalorder %s16_s13, %s16_s13 }
   0x9   :  { %p168_p3 = scmp.ne.s32.totalorder %s16_s13, %s167_s21  ;;  %p173_p5 = scmp.lt.s32.totalorder %s167_s21, %s167_s21 }
   0xb   :  { %p174_p6 = por %p173_p5, %p172_p4 }
   0xd   :  { %p175_p7 = pnand %p174_p6, %p168_p3 }
   0xf   :  { %178 = shalt.err (!%p175_p7)
}
  0x10   :  { %s206_s22 = smov 128   ;;  %s207_s23 = smov 8  }
  0x11   :  { %21 = dma.hbm_to_vmem [thread:$0]  %s272_s0, 256, %s16_s13, [#allocation3], %s206_s22, %s206_s22, %s207_s23  }
  0x12   :  { %201 = dma.done.wait [#allocation3], 256  }
  0x13   :  { %202 = vsyncadd [#allocation3], 4294967040  ;;  %v242_v0 = vld [vmem:[#allocation2] sm:$0xff]  ;;  %vm41_vm0 = vcmask 261120   ;;  %v247_v2 = vld [vmem:[#allocation2 + $0x8] sm:$0xff]  ;;  %v208_v7 = vmov 0  }
  0x14   :  { %v137_v1 = vld [vmem:[%s273_s1] ss:$0 sm:$0xff]  ;;  %143 = vset.pattern.permute.xlu1 %v208_v7  ;;  %144 = vset.pattern.permute.xlu0 %v208_v7  ;;  %vm56_vm1 = vcmask 7168   ;;  %s209_s1 = smov [#allocation5]   ;;  %vm117_vm2 = vcmask 1041409   ;;  %vm120_vm3 = vcmask 254976  }
  0x15   :  { %v39_v3 = vmul.f32 %v137_v1, %v242_v0  ;;  %v40_v4 = vmul.f32 %v137_v1, %v247_v2  ;;  %v32_v8 = vld [vmem:[%s274_s2] sm:$0xff]  ;;  %s128_s2 = sshll.u32 %s209_s1, 4  ;;  %s129_s2 = int_to_ptr.vmem [resolvable:$true] %s128_s2 }
  0x16   :  { %s179_s29 = scalar_lea.vmem %s129_s2, 32  ;;  %p184_p9 = scmp.lt.s32.totalorder %s129_s2, %s129_s2 }
  0x17   :  { %v42_v5 = vsel %vm41_vm0, %v39_v3, 0.0  ;;  %v45_v6 = vsel %vm41_vm0, %v40_v4, 0.0  ;;  %p180_p8 = scmp.ne.s32.totalorder %s129_s2, %s179_s29  ;;  %p185_p10 = scmp.lt.s32.totalorder %s179_s29, %s179_s29 }
  0x18   :  { %43 = vadd.xlane.f32.xlu0 %v42_v5 }
  0x19   :  { %p186_p11 = por %p185_p10, %p184_p9 }
  0x1b   :  { %p187_p12 = pnand %p186_p11, %p180_p8 }
  0x1c   :  { %46 = vadd.xlane.f32.xlu0 %v45_v6 }
  0xa5   :  { %v44_v9 = vpop.xlane.xlu0 %43 }
  0xa6   :  { %v48_v10 = vadd.f32 %v44_v9, %v32_v8 }
  0xa8   :  { %145 = vtanh.f32 %v48_v10 }
  0xa9   :  { %v47_v11 = vpop.xlane.xlu0 %46 }
  0xaa   :  { %v49_v12 = vadd.f32 %v47_v11, %v32_v8 }
  0xac   :  { %147 = vtanh.f32 %v49_v12 }
  0xb2   :  { %v146_v13 = vpop.eup %145 }
  0xb3   :  { %v52_v14 = vmul.f32 1.442695, %v146_v13 }
  0xb5   :  { %149 = vpow2.f32 %v52_v14 }
  0xb6   :  { %v148_v15 = vpop.eup %147 }
  0xb7   :  { %v54_v16 = vmul.f32 1.442695, %v148_v15 }
  0xb9   :  { %151 = vpow2.f32 %v54_v16 }
  0xbf   :  { %v150_v17 = vpop.eup %149 }
  0xc0   :  { %v57_v18 = vsel %vm56_vm1, %v150_v17, 0.0 }
  0xc1   :  { %v58_v19 = vrot.slane %v57_v18, 4 }
  0xc3   :  { %v152_v20 = vpop.eup %151  ;;  %v59_v21 = vadd.f32 %v58_v19, %v57_v18 }
  0xc4   :  { %v64_v22 = vsel %vm56_vm1, %v152_v20, 0.0 }
  0xc5   :  { %v65_v23 = vrot.slane %v64_v22, 4  ;;  %v60_v24 = vrot.slane %v59_v21, 2 }
  0xc7   :  { %v66_v25 = vadd.f32 %v65_v23, %v64_v22  ;;  %v61_v26 = vadd.f32 %v60_v24, %v59_v21 }
  0xc9   :  { %v62_v27 = vrot.slane %v61_v26, 1  ;;  %v67_v28 = vrot.slane %v66_v25, 2 }
  0xcb   :  { %v63_v29 = vadd.f32 %v62_v27, %v61_v26  ;;  %v68_v30 = vadd.f32 %v67_v28, %v66_v25 }
  0xcd   :  { %153 = vrcp.f32 %v63_v29  ;;  %v69_v31 = vrot.slane %v68_v30, 1 }
  0xcf   :  { %v70_v32 = vadd.f32 %v69_v31, %v68_v30 }
  0xd1   :  { %155 = vrcp.f32 %v70_v32 }
  0xd7   :  { %v154_v33 = vpop.eup %153 }
  0xd8   :  { %v73_v34 = vmul.f32 %v154_v33, %v63_v29 }
  0xda   :  { %v75_v35 = vsub.f32 2.0, %v73_v34 }
  0xdb   :  { %v156_v36 = vpop.eup %155 }
  0xdc   :  { %v77_v37 = vmul.f32 %v154_v33, %v75_v35  ;;  %v74_v38 = vmul.f32 %v156_v36, %v70_v32 }
  0xde   :  { %v79_v39 = vmul.f32 %v77_v37, %v63_v29  ;;  %v76_v40 = vsub.f32 2.0, %v74_v38 }
  0xe0   :  { %v81_v41 = vsub.f32 2.0, %v79_v39  ;;  %v78_v42 = vmul.f32 %v156_v36, %v76_v40 }
  0xe2   :  { %v83_v43 = vmul.f32 %v81_v41, %v77_v37  ;;  %v80_v44 = vmul.f32 %v78_v42, %v70_v32 }
  0xe4   :  { %v85_v45 = vmul.f32 %v150_v17, %v83_v43  ;;  %v82_v46 = vsub.f32 2.0, %v80_v44 }
  0xe6   :  { %v87_v47 = vadd.f32 1e-10, %v85_v45  ;;  %v84_v48 = vmul.f32 %v82_v46, %v78_v42 }
  0xe8   :  { %91 = vperm.xlu1 %143, %v87_v47   ;;  %v86_v49 = vmul.f32 %v152_v20, %v84_v48 }
  0xea   :  { %v88_v50 = vadd.f32 1e-10, %v86_v49 }
  0xec   :  { %96 = vperm.xlu1 %143, %v88_v50  }
 0x167   :  { %v92_v51 = vpop.permute.xlu1 %91 }
 0x168   :  { %v99_v52 = vmul.f32 %v92_v51, %v242_v0 }
 0x16a   :  { %v101_v53 = vsel %vm41_vm0, %v99_v52, 0.0 }
 0x16b   :  { %v102_v54 = vrot.slane %v101_v53, 4  ;;  %v97_v55 = vpop.permute.xlu1 %96 }
 0x16c   :  { %v100_v56 = vmul.f32 %v97_v55, %v247_v2 }
 0x16d   :  { %v103_v57 = vadd.f32 %v102_v54, %v101_v53 }
 0x16e   :  { %v108_v58 = vsel %vm41_vm0, %v100_v56, 0.0 }
 0x16f   :  { %v104_v59 = vrot.slane %v103_v57, 2  ;;  %v109_v60 = vrot.slane %v108_v58, 4 }
 0x171   :  { %v105_v61 = vadd.f32 %v104_v59, %v103_v57  ;;  %v110_v62 = vadd.f32 %v109_v60, %v108_v58 }
 0x173   :  { %v111_v63 = vrot.slane %v110_v62, 2  ;;  %v106_v1 = vrot.slane %v105_v61, 1 }
 0x175   :  { %v112_v3 = vadd.f32 %v111_v63, %v110_v62  ;;  %v107_v0 = vadd.f32 %v106_v1, %v105_v61 }
 0x177   :  { %v113_v4 = vrot.slane %v112_v3, 1 }
 0x179   :  { %v114_v5 = vadd.f32 %v113_v4, %v112_v3 }
 0x17b   :  { %v118_v6 = vsel %vm117_vm2, %v114_v5, %v107_v0 }
 0x17c   :  { %121 = vst.msk [vmem:[#allocation5] sm:$0x3] %vm120_vm3, %v118_v6 }
 0x17d   :  { %190 = shalt.err (!%p187_p12)
}
 0x17e   :  { %s191_s5 = scalar_lea.hbm %s275_s3, 32 }
 0x17f   :  { %p192_p13 = scmp.ne.s32.totalorder %s275_s3, %s191_s5  ;;  %p195_p0 = scmp.lt.u32.totalorder %s191_s5, %s275_s3 }
 0x181   :  { %p197_p1 = pnand %p195_p0, %p192_p13 }
 0x183   :  { %200 = shalt.err (!%p197_p1)
}
 0x184   :  { %131 = dma.vmem_to_hbm [thread:$0]  %s129_s2, 32, %s275_s3, [#allocation4]  }
 0x185   :  { %203 = dma.done.wait [#allocation4], 32  }
 0x186   :  { %204 = vsyncadd [#allocation4], 4294967264 }
 0x187   :  { %135 = vsyncpa [#allocation3], 1 }
 0x188   :  { %136 = vsyncpa [#allocation4], 1 }

</bundles_post_ra>
